<compile_context>
chip_gen: v7x
topology: tpu7x:2x2x1
jax: 0.10.0
libtpu: 0.0.40
codegen_flags: <defaults>
</compile_context>

<pallas_src>
import functools

import jax
import jax.numpy as jnp
from jax.experimental import pallas as pl
from jax.experimental.pallas import tpu as pltpu


def _round_up(x: int, m: int) -> int:
    return (x + m - 1) // m * m


def _vmem_capacity_bytes() -> int:
    """Physical VMEM per TensorCore (128 MiB on v5e/v6e, 64 MiB on v7x)."""
    try:
        info = pltpu.get_tpu_info()
        for name in ("vmem_capacity_bytes", "vmem_bytes", "vmem_size_bytes"):
            v = getattr(info, name, None)
            if v:
                return int(v)
    except Exception:
        pass
    try:
        kind = jax.devices()[0].device_kind.lower()
        if "v7" in kind:
            return 64 << 20
    except Exception:
        pass
    return 128 << 20


def _num_tensorcores() -> int:
    """TensorCores sharing the 'parallel' grid axis (2 on v7x / megacore, else 1)."""
    cores = 1
    try:
        info = pltpu.get_tpu_info()
        for name in ("num_cores", "core_count", "num_tensorcores"):
            v = getattr(info, name, None)
            if v:
                cores = int(v)
                break
    except Exception:
        pass
    if cores <= 1:
        try:
            kind = jax.devices()[0].device_kind.lower()
            if any(t in kind for t in ("v7", "v4", "v5p", "v5 p")):
                cores = 2
        except Exception:
            pass
    return max(1, min(cores, 2))


def _choose_t_chunk(t_pad: int, b_tile: int, d_pad: int, chunk_budget: int) -> int:
    """Largest multiple-of-8 divisor of t_pad whose per-chunk f32 intermediates fit the budget."""
    best = 8
    n8 = t_pad // 8
    for k in range(1, n8 + 1):
        if n8 % k == 0:
            tc = 8 * k
            if 2 * b_tile * tc * d_pad * 4 <= chunk_budget:
                best = tc
    return best


def _block_vmem_bytes(b_tile, t_pad, t_chunk, d_pad, f_isz, w_isz, out_isz):
    f_block = 2 * b_tile * t_pad * d_pad * f_isz          # double-buffered f input block
    w_block = 2 * d_pad * d_pad * w_isz                    # broadcast weight (still 2 buffers)
    small = 4 * d_pad * 4                                  # bias + context rows
    out_block = 2 * b_tile * d_pad * out_isz
    live = (2 * b_tile * t_chunk * d_pad * 4               # per-chunk u / weighted product
            + b_tile * t_pad * 4                           # score buffer
            + b_tile * d_pad * 4)                          # f32 accumulator
    return f_block + w_block + small + out_block + live


_STEP_OVERHEAD_BYTES = 512 * 1024   # ~0.35 us/grid-step expressed in HBM-byte equivalents


def _select_tiling(B, T, D, f_isz, w_isz, out_isz, budget, num_cores):
    """Pick b_tile from a VMEM budget + crude wall-clock model (bytes + step overhead,
    padded-batch waste, >= num_cores tiles preferred)."""
    d_pad = _round_up(D, 128)
    t_pad = _round_up(T, 8)
    b_pad8 = _round_up(B, 8)
    row_bytes = t_pad * d_pad * f_isz

    candidates = sorted({c for c in (8, 16, 32, 64, 128, 256, 512) if c <= b_pad8}
                        | ({b_pad8} if b_pad8 <= 512 else set()))

    def key(ct):
        bp = _round_up(B, ct)
        nt = bp // ct
        tc = _choose_t_chunk(t_pad, ct, d_pad, budget // 4)
        fits = _block_vmem_bytes(ct, t_pad, tc, d_pad, f_isz, w_isz, out_isz) <= budget
        # serial grid steps per TensorCore x (HBM bytes per step + per-step overhead)
        wall = -(-nt // num_cores) * (ct * row_bytes + _STEP_OVERHEAD_BYTES)
        return (fits, -wall, ct)

    b_tile = max(candidates, key=key)
    b_pad = _round_up(B, b_tile)
    t_chunk = _choose_t_chunk(t_pad, b_tile, d_pad, budget // 4)
    block_bytes = _block_vmem_bytes(b_tile, t_pad, t_chunk, d_pad, f_isz, w_isz, out_isz)
    return d_pad, t_pad, b_tile, b_pad, t_chunk, block_bytes


def sent_att_kernel(f_ref, w_ref, b_ref, c_ref, out_ref, *, t_chunk, t_valid, approx_recip):
    """One batch tile of sentence-level attention.

    f_ref:   (b_tile, t_pad, d_pad)  zero-padded, batch-major
    w_ref:   (d_pad, d_pad)
    b_ref:   (1, d_pad)   f32
    c_ref:   (1, d_pad)   f32 context vector along lanes
    out_ref: (b_tile, d_pad)
    """
    b_tile, t_pad, d_pad = f_ref.shape
    n_chunks = t_pad // t_chunk

    w = w_ref[...]
    bias = b_ref[...]
    ctx = c_ref[...]

    # ---- Pass 1: projection + context score, chunked over T so the full (b*t, d) `u`
    #      never lives in VMEM; only the small (b_tile, t_pad) score buffer survives.
    chunk_scores = []
    for ci in range(n_chunks):                      # static trip count
        t0 = ci * t_chunk
        chunk = f_ref[:, t0:t0 + t_chunk, :].reshape(b_tile * t_chunk, d_pad)
        u = jnp.tanh(jnp.dot(chunk, w, preferred_element_type=jnp.float32) + bias)
        s = jnp.tanh(jnp.sum(u.reshape(b_tile, t_chunk, d_pad) * ctx, axis=-1))
        chunk_scores.append(s)                      # (b_tile, t_chunk) f32, T on lanes
    scores = chunk_scores[0] if n_chunks == 1 else jnp.concatenate(chunk_scores, axis=-1)

    # Mask padded time steps (static branch: only emitted when t_pad > t_valid).
    if t_pad > t_valid:
        t_ids = jax.lax.broadcasted_iota(jnp.int32, (b_tile, t_pad), 1)
        scores = jnp.where(t_ids < t_valid, scores, jnp.float32(-1e30))

    # ---- Softmax over T: dense lane reductions per batch row.
    m = jnp.max(scores, axis=-1, keepdims=True)
    e = jnp.exp(scores - m)
    alpha = e * pl.reciprocal(jnp.sum(e, axis=-1, keepdims=True), approx=approx_recip)

    # ---- Pass 2: weighted sum over T in f32, chunked (no full-slab f32 copy of f).
    acc = jnp.zeros((b_tile, d_pad), jnp.float32)
    for ci in range(n_chunks):
        t0 = ci * t_chunk
        chunk = f_ref[:, t0:t0 + t_chunk, :].astype(jnp.float32)
        a = alpha[:, t0:t0 + t_chunk]
        acc = acc + jnp.sum(chunk * a[:, :, None], axis=1)
    out_ref[...] = acc.astype(out_ref.dtype)


def sent_att_net(f_output, h_output, sent_weight, sent_bias, context_weight,
                 *, matmul_dtype=None, vmem_budget_bytes=None):
    """Pallas forward of SentAttNet.  Returns (B, D).

    matmul_dtype: optional low-precision input dtype for f / sent_weight (e.g. jnp.bfloat16,
      recommended on v6e/v7x where this kernel is HBM-bound).  Accumulation, softmax and the
      weighted sum stay f32, but the value path then sees bf16-rounded f, so expect ~1e-3
      deviation from the f32 reference (hence not the default).
    """
    del h_output  # unused in the reference forward pass; kept for API parity
    T, B, D = f_output.shape
    out_dtype = f_output.dtype

    in_dtype = jnp.dtype(matmul_dtype) if matmul_dtype is not None else jnp.dtype(out_dtype)
    f_isz = in_dtype.itemsize
    w_isz = in_dtype.itemsize
    out_isz = jnp.dtype(out_dtype).itemsize

    # ---- Per-generation VMEM budget and tile selection.
    cap = _vmem_capacity_bytes()
    budget = vmem_budget_bytes if vmem_budget_bytes is not None else cap // 2
    num_cores = _num_tensorcores()
    d_pad, t_pad, b_tile, b_pad, t_chunk, block_bytes = _select_tiling(
        B, T, D, f_isz, w_isz, out_isz, budget, num_cores)
    n_tiles = b_pad // b_tile
    # TODO(synk): for very long T (block does not fit even at b_tile=8) add a second
    # "arbitrary" grid axis over T with an online softmax instead of batch-only tiling.

    vmem_limit = int(min(cap - (4 << 20), max(block_bytes + (4 << 20), 32 << 20)))

    # ---- Layout plumbing in XLA, outside the kernel: batch-major, zero-padded,
    #      lane-dense feature axis, sublane-aligned T and batch.
    f_btd = jnp.transpose(f_output, (1, 0, 2))                                   # (B, T, D)
    f_btd = jnp.pad(f_btd, ((0, b_pad - B), (0, t_pad - T), (0, d_pad - D)))
    w = jnp.pad(sent_weight, ((0, d_pad - D), (0, d_pad - D)))                   # (d_pad, d_pad)
    bias = jnp.pad(sent_bias, ((0, 0), (0, d_pad - D))).astype(jnp.float32)      # (1, d_pad)
    c_row = jnp.pad(context_weight.reshape(1, D),
                    ((0, 0), (0, d_pad - D))).astype(jnp.float32)                # (1, d_pad)

    if matmul_dtype is not None:   # bf16 on v6e/v7x: halves HBM traffic for the dominant operand
        f_btd = f_btd.astype(matmul_dtype)
        w = w.astype(matmul_dtype)

    m_rows = b_pad * t_pad
    cost = pl.CostEstimate(
        flops=int(2 * m_rows * d_pad * d_pad + 6 * m_rows * d_pad),
        transcendentals=int(m_rows * d_pad + 3 * m_rows),
        bytes_accessed=int(m_rows * d_pad * f_isz
                           + n_tiles * d_pad * d_pad * w_isz
                           + 4 * d_pad * 4
                           + b_pad * d_pad * out_isz),
    )

    kernel = functools.partial(sent_att_kernel, t_chunk=t_chunk, t_valid=T,
                               approx_recip=matmul_dtype is not None)

    out = pl.pallas_call(
        kernel,
        out_shape=jax.ShapeDtypeStruct((b_pad, d_pad), out_dtype),
        grid=(n_tiles,),
        in_specs=[
            pl.BlockSpec((b_tile, t_pad, d_pad), lambda i: (i, 0, 0)),   # f block (batch tile)
            pl.BlockSpec((d_pad, d_pad), lambda i: (0, 0)),              # sent_weight (broadcast)
            pl.BlockSpec((1, d_pad), lambda i: (0, 0)),                  # sent_bias   (broadcast)
            pl.BlockSpec((1, d_pad), lambda i: (0, 0)),                  # context row (broadcast)
        ],
        out_specs=pl.BlockSpec((b_tile, d_pad), lambda i: (i, 0)),
        compiler_params=pltpu.CompilerParams(
            dimension_semantics=("parallel",),
            vmem_limit_bytes=vmem_limit,
        ),
        cost_estimate=cost,
    )(f_btd, w, bias, c_row)

    return out[:B, :D]


def sent_att_net_ref(f_output, h_output, sent_weight, sent_bias, context_weight):
    # Pure-JAX reference mirroring the PyTorch forward (output shape (B, D)).
    del h_output
    u = jnp.tanh(jnp.einsum("tbd,de->tbe", f_output, sent_weight) + sent_bias[None])
    s = jnp.tanh(jnp.einsum("tbd,do->tbo", u, context_weight))[..., 0]   # (T, B)
    alpha = jax.nn.softmax(s, axis=0)                                     # softmax over T
    return jnp.sum(f_output * alpha[:, :, None], axis=0)                  # (B, D)


if __name__ == "__main__":
    # Small shapes consistent with the module: seq_len=8, batch=2, sent_hidden=16 -> D = 32.
    T, B, hidden = 8, 2, 16
    D = 2 * hidden

    key = jax.random.PRNGKey(0)
    k_f, k_h, k_w, k_b, k_c = jax.random.split(key, 5)

    f_output = jax.random.normal(k_f, (T, B, D), dtype=jnp.float32)
    h_output = jax.random.normal(k_h, (1, B, D), dtype=jnp.float32)   # unused, parity only
    sent_weight = 0.05 * jax.random.normal(k_w, (D, D), dtype=jnp.float32)
    sent_bias = 0.05 * jax.random.normal(k_b, (1, D), dtype=jnp.float32)
    context_weight = 0.05 * jax.random.normal(k_c, (D, 1), dtype=jnp.float32)

    ref = sent_att_net_ref(f_output, h_output, sent_weight, sent_bias, context_weight)

    # Exact-parity f32 path (default).
    out = jax.block_until_ready(
        sent_att_net(f_output, h_output, sent_weight, sent_bias, context_weight))
    assert out.shape == (B, D), out.shape
    assert jnp.allclose(out, ref, atol=1e-5, rtol=1e-5), "f32 path mismatch vs reference"

    # bf16 input path (recommended on v6e/v7x per the perf review); looser tolerance since the
    # value path sees bf16-rounded f.
    out_bf16 = jax.block_until_ready(
        sent_att_net(f_output, h_output, sent_weight, sent_bias, context_weight,
                     matmul_dtype=jnp.bfloat16))
    assert jnp.allclose(out_bf16, ref, atol=3e-2, rtol=3e-2), "bf16 path mismatch vs reference"

    print("KERNEL_OK")
</pallas_src>

<mosaic_0001>
module attributes {stable_mosaic.version = 11 : i64} {
  func.func @sent_att_kernel(%arg0: i32, %arg1: memref<8x8x128xf32, #tpu.memory_space<vmem>>, %arg2: memref<128x128xf32, #tpu.memory_space<vmem>>, %arg3: memref<1x128xf32, #tpu.memory_space<vmem>>, %arg4: memref<1x128xf32, #tpu.memory_space<vmem>>, %arg5: memref<8x128xf32, #tpu.memory_space<vmem>>) attributes {dimension_semantics = [#tpu.dimension_semantics<parallel>], iteration_bounds = array<i64: 1>, scalar_prefetch = 0 : i64, scratch_operands = 0 : i64, tpu.core_type = #tpu.core_type<tc>, window_params = [{transform_indices = @transform_0, window_bounds = array<i64: 8, 8, 128>}, {pipeline_mode = #tpu.pipeline_mode<synchronous>, transform_indices = @transform_1, window_bounds = array<i64: 128, 128>}, {pipeline_mode = #tpu.pipeline_mode<synchronous>, transform_indices = @transform_2, window_bounds = array<i64: 1, 128>}, {pipeline_mode = #tpu.pipeline_mode<synchronous>, transform_indices = @transform_3, window_bounds = array<i64: 1, 128>}, {transform_indices = @transform_4, window_bounds = array<i64: 8, 128>}]} {
    %c0 = arith.constant 0 : index
    %c0_0 = arith.constant 0 : index
    %0 = vector.load %arg2[%c0, %c0_0] : memref<128x128xf32, #tpu.memory_space<vmem>>, vector<128x128xf32>
    %c0_1 = arith.constant 0 : index
    %c0_2 = arith.constant 0 : index
    %1 = vector.load %arg3[%c0_1, %c0_2] : memref<1x128xf32, #tpu.memory_space<vmem>>, vector<1x128xf32>
    %c0_3 = arith.constant 0 : index
    %c0_4 = arith.constant 0 : index
    %2 = vector.load %arg4[%c0_3, %c0_4] : memref<1x128xf32, #tpu.memory_space<vmem>>, vector<1x128xf32>
    %c0_5 = arith.constant 0 : index
    %c0_6 = arith.constant 0 : index
    %c0_7 = arith.constant 0 : index
    %3 = vector.load %arg1[%c0_5, %c0_6, %c0_7] : memref<8x8x128xf32, #tpu.memory_space<vmem>>, vector<8x8x128xf32>
    %4 = vector.shape_cast %3 : vector<8x8x128xf32> to vector<64x128xf32>
    %cst = arith.constant dense<0.000000e+00> : vector<64x128xf32>
    %5 = tpu.matmul %4, %0, %cst {dimension_numbers = #tpu.dot_dimension_numbers<[1], [0], [0], [1], [0, 0, 1, 1], [], []>} : vector<64x128xf32>, vector<128x128xf32>, vector<64x128xf32> -> vector<64x128xf32>
    %6 = vector.broadcast %1 : vector<1x128xf32> to vector<64x128xf32>
    %7 = arith.addf %5, %6 : vector<64x128xf32>
    %8 = math.tanh %7 : vector<64x128xf32>
    %9 = vector.shape_cast %8 : vector<64x128xf32> to vector<8x8x128xf32>
    %10 = vector.shape_cast %2 : vector<1x128xf32> to vector<1x1x128xf32>
    %11 = vector.broadcast %10 : vector<1x1x128xf32> to vector<8x8x128xf32>
    %12 = arith.mulf %9, %11 : vector<8x8x128xf32>
    %cst_8 = arith.constant dense<0.000000e+00> : vector<8x8xf32>
    %13 = vector.multi_reduction <add>, %12, %cst_8 [2] : vector<8x8x128xf32> to vector<8x8xf32>
    %14 = math.tanh %13 : vector<8x8xf32>
    %cst_9 = arith.constant dense<0xFF800000> : vector<8xf32>
    %15 = vector.multi_reduction <maximumf>, %14, %cst_9 [1] : vector<8x8xf32> to vector<8xf32>
    %16 = vector.shape_cast %15 : vector<8xf32> to vector<8x1xf32>
    %17 = vector.broadcast %16 : vector<8x1xf32> to vector<8x8xf32>
    %18 = arith.subf %14, %17 : vector<8x8xf32>
    %19 = math.exp %18 : vector<8x8xf32>
    %cst_10 = arith.constant dense<0.000000e+00> : vector<8xf32>
    %20 = vector.multi_reduction <add>, %19, %cst_10 [1] : vector<8x8xf32> to vector<8xf32>
    %21 = vector.shape_cast %20 : vector<8xf32> to vector<8x1xf32>
    %22 = tpu.reciprocal %21 : vector<8x1xf32> -> vector<8x1xf32>
    %23 = vector.broadcast %22 : vector<8x1xf32> to vector<8x8xf32>
    %24 = arith.mulf %19, %23 : vector<8x8xf32>
    %cst_11 = arith.constant 0.000000e+00 : f32
    %25 = vector.broadcast %cst_11 : f32 to vector<8x128xf32>
    %c0_12 = arith.constant 0 : index
    %c0_13 = arith.constant 0 : index
    %c0_14 = arith.constant 0 : index
    %26 = vector.load %arg1[%c0_12, %c0_13, %c0_14] : memref<8x8x128xf32, #tpu.memory_space<vmem>>, vector<8x8x128xf32>
    %27 = vector.shape_cast %24 : vector<8x8xf32> to vector<8x8x1xf32>
    %28 = vector.broadcast %27 : vector<8x8x1xf32> to vector<8x8x128xf32>
    %29 = arith.mulf %26, %28 : vector<8x8x128xf32>
    %cst_15 = arith.constant dense<0.000000e+00> : vector<8x128xf32>
    %30 = vector.multi_reduction <add>, %29, %cst_15 [1] : vector<8x8x128xf32> to vector<8x128xf32>
    %31 = arith.addf %25, %30 : vector<8x128xf32>
    %c0_16 = arith.constant 0 : index
    %c0_17 = arith.constant 0 : index
    %32 = vector.load %arg5[%c0_16, %c0_17] : memref<8x128xf32, #tpu.memory_space<vmem>>, vector<8x128xf32>
    tpu.vector_store %arg5[%c0_16, %c0_17], %31 {strides = array<i32>} : memref<8x128xf32, #tpu.memory_space<vmem>>, vector<8x128xf32>,
    return
  }
  func.func @transform_0(%arg0: i32) -> (i32, i32, i32) {
    %c0_i32 = arith.constant 0 : i32
    %c0_i32_0 = arith.constant 0 : i32
    %c0_i32_1 = arith.constant 0 : i32
    return %arg0, %c0_i32, %c0_i32_0 : i32, i32, i32
  }
  func.func @transform_1(%arg0: i32) -> (i32, i32) {
    %c0_i32 = arith.constant 0 : i32
    %c0_i32_0 = arith.constant 0 : i32
    %c0_i32_1 = arith.constant 0 : i32
    return %c0_i32, %c0_i32_0 : i32, i32
  }
  func.func @transform_2(%arg0: i32) -> (i32, i32) {
    %c0_i32 = arith.constant 0 : i32
    %c0_i32_0 = arith.constant 0 : i32
    %c0_i32_1 = arith.constant 0 : i32
    return %c0_i32, %c0_i32_0 : i32, i32
  }
  func.func @transform_3(%arg0: i32) -> (i32, i32) {
    %c0_i32 = arith.constant 0 : i32
    %c0_i32_0 = arith.constant 0 : i32
    %c0_i32_1 = arith.constant 0 : i32
    return %c0_i32, %c0_i32_0 : i32, i32
  }
  func.func @transform_4(%arg0: i32) -> (i32, i32) {
    %c0_i32 = arith.constant 0 : i32
    %c0_i32_0 = arith.constant 0 : i32
    return %arg0, %c0_i32 : i32, i32
  }
}

</mosaic_0001>

<bundles_post_ra>
// kernel: tpu_custom_call.1
= control target key start
LH: loop header
LB: loop body
LE: loop exit
PB: predicated region body
PF: predicated region fallthrough
CT: control target
= control target key end

     0   :  { %9 = vsyncpa [#allocation3], 0  ;;  %s1054_s0 = inlined_call_operand.hbm [shape: f32[8,8,128], index: 0, kind: input, shape index: {}]   ;;  %s1055_s1 = inlined_call_operand.hbm [shape: f32[128,128], index: 1, kind: input, shape index: {}]   ;;  %s1056_s2 = inlined_call_operand.vmem [shape: f32[1,128], index: 2, kind: input, shape index: {}]   ;;  %s1057_s3 = inlined_call_operand.vmem [shape: f32[1,128], index: 3, kind: input, shape index: {}]   ;;  %s1058_s4 = inlined_call_operand.hbm [shape: f32[8,128], index: 4, kind: output, shape index: {}]  }
   0x1   :  { %10 = vsyncpa [#allocation6], 0 }
   0x2   :  { %11 = vsyncpa [#allocation4], 0  ;;  %s865_s15 = smov [#allocation2]   ;;  %s793_s19 = scalar_lea.hbm %s1054_s0, 1024 }
   0x3   :  { %s17_s16 = sshll.u32 %s865_s15, 4  ;;  %p794_p0 = scmp.ne.s32.totalorder %s1054_s0, %s793_s19  ;;  %s18_s16 = int_to_ptr.vmem [resolvable:$true] %s17_s16 }
   0x4   :  { %p797_p1 = scmp.lt.u32.totalorder %s793_s19, %s1054_s0 }
   0x6   :  { %p799_p2 = pnand %p797_p1, %p794_p0 }
   0x8   :  { %802 = shalt.err (!%p799_p2)
}
   0x9   :  { %s803_s24 = scalar_lea.vmem %s18_s16, 1024  ;;  %p808_p4 = scmp.lt.s32.totalorder %s18_s16, %s18_s16 }
   0xa   :  { %p804_p3 = scmp.ne.s32.totalorder %s18_s16, %s803_s24  ;;  %p809_p5 = scmp.lt.s32.totalorder %s803_s24, %s803_s24 }
   0xc   :  { %p810_p6 = por %p809_p5, %p808_p4 }
   0xe   :  { %p811_p7 = pnand %p810_p6, %p804_p3 }
  0x10   :  { %814 = shalt.err (!%p811_p7)
}
  0x11   :  { %s866_s25 = smov 128   ;;  %s867_s26 = smov 8  }
  0x12   :  { %23 = dma.hbm_to_vmem [thread:$0]  %s1054_s0, 1024, %s18_s16, [#allocation3], %s866_s25, %s866_s25, %s867_s26  }
  0x13   :  { %s868_s29 = smov [#allocation5]   ;;  %s815_s7 = scalar_lea.hbm %s1055_s1, 2048 }
  0x14   :  { %s29_s30 = sshll.u32 %s868_s29, 4  ;;  %p816_p8 = scmp.ne.s32.totalorder %s1055_s1, %s815_s7  ;;  %s30_s30 = int_to_ptr.vmem [resolvable:$true] %s29_s30 }
  0x15   :  { %p819_p9 = scmp.lt.u32.totalorder %s815_s7, %s1055_s1 }
  0x17   :  { %p821_p10 = pnand %p819_p9, %p816_p8 }
  0x19   :  { %824 = shalt.err (!%p821_p10)
}
  0x1a   :  { %s825_s12 = scalar_lea.vmem %s30_s30, 2048  ;;  %p830_p12 = scmp.lt.s32.totalorder %s30_s30, %s30_s30 }
  0x1b   :  { %p826_p11 = scmp.ne.s32.totalorder %s30_s30, %s825_s12  ;;  %p831_p13 = scmp.lt.s32.totalorder %s825_s12, %s825_s12 }
  0x1d   :  { %p832_p0 = por %p831_p13, %p830_p12 }
  0x1f   :  { %p833_p1 = pnand %p832_p0, %p826_p11 }
  0x21   :  { %836 = shalt.err (!%p833_p1)
}
  0x22   :  { %35 = dma.hbm_to_vmem [thread:$0]  %s1055_s1, 2048, %s30_s30, [#allocation6], %s866_s25, %s866_s25, %s867_s26  }
  0x23   :  { %859 = dma.done.wait [#allocation3], 1024  }
  0x24   :  { %860 = vsyncadd [#allocation3], 4294966272 }
  0x25   :  { %861 = dma.done.wait [#allocation6], 2048  }
  0x26   :  { %862 = vsyncadd [#allocation6], 4294965248  ;;  %v46_v0 = vld [vmem:[#allocation5] sm:$0xff]  ;;  %v47_v1 = vld [vmem:[#allocation5 + $0x8] sm:$0xff]  ;;  %vm271_vm0 = vcmask 1041409   ;;  %vm273_vm1 = vcmask 1042434  }
  0x27   :  { %v48_v2 = vld [vmem:[#allocation5 + $0x10] sm:$0xff]  ;;  %v687_v3 = vpack.c.bf16 %v47_v1, %v46_v0  ;;  %v49_v4 = vld [vmem:[#allocation5 + $0x18] sm:$0xff]  ;;  %v50_v6 = vld [vmem:[#allocation5 + $0x20] sm:$0xff]  ;;  %vm275_vm2 = vcmask 1043459   ;;  %vm277_vm3 = vcmask 1044484   ;;  %vm279_vm4 = vcmask 1045509  }
  0x28   :  { %v691_v5 = vpack.c.bf16 %v49_v4, %v48_v2  ;;  %v51_v7 = vld [vmem:[#allocation5 + $0x28] sm:$0xff]  ;;  %v920_v9 = vld [vmem:[#allocation2] sm:$0xff]  ;;  %v52_v10 = vld [vmem:[#allocation5 + $0x30] sm:$0xff]  ;;  %vm281_vm5 = vcmask 1046534   ;;  %vm283_vm6 = vcmask 1047559   ;;  %vm286_vm7 = vcmask 64512  }
  0x29   :  { %688 = vmatprep.subr.bf16.mxu0 %v687_v3  ;;  %719 = vmatprep.subr.bf16.mxu1 %v687_v3  ;;  %v695_v8 = vpack.c.bf16 %v51_v7, %v50_v6  ;;  %v53_v11 = vld [vmem:[#allocation5 + $0x38] sm:$0xff]  ;;  %v923_v12 = vld [vmem:[#allocation2 + $0x20] sm:$0xff]  ;;  %v55_v15 = vld [vmem:[#allocation5 + $0x48] sm:$0xff] }
  0x2a   :  { %690 = vmatpush3.bf16.msra.mxu0 %v687_v3  ;;  %727 = vmatpush3.bf16.msra.mxu1 %v687_v3  ;;  %v699_v13 = vpack.c.bf16 %v53_v11, %v52_v10  ;;  %v54_v14 = vld [vmem:[#allocation5 + $0x40] sm:$0xff]  ;;  %v56_v17 = vld [vmem:[#allocation5 + $0x50] sm:$0xff]  ;;  %v57_v18 = vld [vmem:[#allocation5 + $0x58] sm:$0xff] }
  0x2b   :  { %692 = vmatprep.subr.bf16.mxu0 %v691_v5  ;;  %720 = vmatprep.subr.bf16.mxu1 %v691_v5  ;;  %v703_v16 = vpack.c.bf16 %v55_v15, %v54_v14  ;;  %v707_v19 = vpack.c.bf16 %v57_v18, %v56_v17  ;;  %v58_v20 = vld [vmem:[#allocation5 + $0x60] sm:$0xff]  ;;  %v59_v21 = vld [vmem:[#allocation5 + $0x68] sm:$0xff]  ;;  %v60_v23 = vld [vmem:[#allocation5 + $0x70] sm:$0xff] }
  0x2c   :  { %675 = vmatprep.mubr.f32.mxu0 %v920_v9  ;;  %681 = vmatprep.mubr.f32.mxu1 %v923_v12  ;;  %v711_v22 = vpack.c.bf16 %v59_v21, %v58_v20  ;;  %v61_v24 = vld [vmem:[#allocation5 + $0x78] sm:$0xff]  ;;  %v926_v26 = vld [vmem:[#allocation2 + $0x8] sm:$0xff]  ;;  %v930_v28 = vld [vmem:[#allocation2 + $0x10] sm:$0xff] }
  0x2d   :  { %v715_v25 = vpack.c.bf16 %v61_v24, %v60_v23  ;;  %v928_v27 = vld [vmem:[#allocation2 + $0x28] sm:$0xff]  ;;  %v932_v29 = vld [vmem:[#allocation2 + $0x30] sm:$0xff]  ;;  %v937_v30 = vld [vmem:[#allocation2 + $0x18] sm:$0xff] }
  0x2e   :  { %694 = vmatpush3.bf16.msra.mxu0 %v691_v5  ;;  %728 = vmatpush3.bf16.msra.mxu1 %v691_v5  ;;  %v940_v31 = vld [vmem:[#allocation2 + $0x38] sm:$0xff]  ;;  %v617_v32 = vld [vmem:[%s1056_s2] ss:$0 sm:$0xff]  ;;  %v237_v5 = vlaneseq }
  0x2f   :  { %696 = vmatprep.subr.bf16.mxu0 %v695_v8  ;;  %721 = vmatprep.subr.bf16.mxu1 %v695_v8  ;;  %v618_v48 = vld [vmem:[%s1057_s3] ss:$0 sm:$0xff]  ;;  %s870_s3 = smov [#allocation7]  }
  0x30   :  { %v950_v10 = vshrl.u32 %v237_v5, 7  ;;  %s607_s16 = sshll.u32 %s870_s3, 4  ;;  %s608_s16 = int_to_ptr.vmem [resolvable:$true] %s607_s16 }
  0x31   :  { %s837_s17 = scalar_lea.vmem %s608_s16, 128  ;;  %p842_p3 = scmp.lt.s32.totalorder %s608_s16, %s608_s16 }
  0x32   :  { %698 = vmatpush3.bf16.msra.mxu0 %v695_v8  ;;  %729 = vmatpush3.bf16.msra.mxu1 %v695_v8  ;;  %v238_v8 = vand.u32 127, %v237_v5  ;;  %p838_p2 = scmp.ne.s32.totalorder %s608_s16, %s837_s17  ;;  %p843_p4 = scmp.lt.s32.totalorder %s837_s17, %s837_s17 }
  0x33   :  { %700 = vmatprep.subr.bf16.mxu0 %v699_v13  ;;  %722 = vmatprep.subr.bf16.mxu1 %v699_v13 }
  0x34   :  { %v953_v15 = vsub.s32 %v238_v8, %v950_v10  ;;  %p844_p5 = por %p843_p4, %p842_p3 }
  0x36   :  { %702 = vmatpush3.bf16.msra.mxu0 %v699_v13  ;;  %730 = vmatpush3.bf16.msra.mxu1 %v699_v13  ;;  %p845_p6 = pnand %p844_p5, %p838_p2 }
  0x37   :  { %704 = vmatprep.subr.bf16.mxu0 %v703_v16  ;;  %723 = vmatprep.subr.bf16.mxu1 %v703_v16 }
  0x3a   :  { %706 = vmatpush3.bf16.msra.mxu0 %v703_v16  ;;  %731 = vmatpush3.bf16.msra.mxu1 %v703_v16 }
  0x3b   :  { %708 = vmatprep.subr.bf16.mxu0 %v707_v19  ;;  %724 = vmatprep.subr.bf16.mxu1 %v707_v19 }
  0x3e   :  { %710 = vmatpush3.bf16.msra.mxu0 %v707_v19  ;;  %732 = vmatpush3.bf16.msra.mxu1 %v707_v19 }
  0x3f   :  { %712 = vmatprep.subr.bf16.mxu0 %v711_v22  ;;  %725 = vmatprep.subr.bf16.mxu1 %v711_v22 }
  0x42   :  { %714 = vmatpush3.bf16.msra.mxu0 %v711_v22  ;;  %733 = vmatpush3.bf16.msra.mxu1 %v711_v22 }
  0x43   :  { %716 = vmatprep.subr.bf16.mxu0 %v715_v25  ;;  %726 = vmatprep.subr.bf16.mxu1 %v715_v25 }
  0x46   :  { %718 = vmatpush3.bf16.msra.mxu0 %v715_v25  ;;  %734 = vmatpush3.bf16.msra.mxu1 %v715_v25 }
  0x49   :  { %676 = vmatmul.mubr.f32.vlgmr.msra.gmra.mrb[0].mxu0 %v926_v26  ;;  %682 = vmatmul.mubr.f32.vlgmr.msra.gmra.mrb[0].mxu1 %v928_v27 }
  0x4a   :  { %678 = vmatprep.mubr.f32.mxu0 %v930_v28  ;;  %684 = vmatprep.mubr.f32.mxu1 %v932_v29 }
  0x4d   :  { %679 = vmatmul.mubr.f32.gmra.mrb[2].mxu0 %v937_v30  ;;  %685 = vmatmul.mubr.f32.gmra.mrb[2].mxu1 %v940_v31 }
 0x11c   :  { %v677_v33 = vpop.f32.mrb[0].mxu0  ;;  %v683_v34 = vpop.f32.mrb[0].mxu1 }
 0x11d   :  { %v150_v35 = vadd.f32 %v677_v33, %v617_v32  ;;  %v144_v36 = vpop.f32.mrb[1].mxu0  ;;  %v164_v37 = vpop.f32.mrb[1].mxu1  ;;  %v170_v47 = vadd.f32 %v683_v34, %v617_v32 }
 0x11e   :  { %v145_v38 = vadd.f32 %v617_v32, %v144_v36  ;;  %v165_v39 = vadd.f32 %v617_v32, %v164_v37 }
 0x11f   :  { %743 = vtanh.f32 %v150_v35 }
 0x120   :  { %v680_v40 = vpop.f32.mrb[2].mxu0  ;;  %v686_v41 = vpop.f32.mrb[2].mxu1  ;;  %745 = vtanh.f32 %v145_v38 }
 0x121   :  { %v160_v42 = vadd.f32 %v680_v40, %v617_v32  ;;  %v154_v43 = vpop.f32.mrb[3].mxu0  ;;  %v174_v44 = vpop.f32.mrb[3].mxu1  ;;  %747 = vtanh.f32 %v165_v39  ;;  %v180_v50 = vadd.f32 %v686_v41, %v617_v32 }
 0x122   :  { %v155_v45 = vadd.f32 %v617_v32, %v154_v43  ;;  %v175_v46 = vadd.f32 %v617_v32, %v174_v44 }
 0x123   :  { %749 = vtanh.f32 %v160_v42 }
 0x124   :  { %751 = vtanh.f32 %v155_v45 }
 0x125   :  { %753 = vtanh.f32 %v175_v46  ;;  %v869_v46 = vmov 0  }
 0x126   :  { %755 = vtanh.f32 %v170_v47  ;;  %742 = vset.pattern.permute.xlu0 %v869_v46  ;;  %741 = vset.pattern.permute.xlu1 %v869_v46  ;;  %v293_v47 = vsub.s32 0, %v950_v10 }
 0x127   :  { %757 = vtanh.f32 %v180_v50  ;;  %v305_v50 = vsub.s32 3, %v950_v10 }
 0x129   :  { %v744_v49 = vpop.eup %743 }
 0x12a   :  { %v198_v51 = vmul.f32 %v744_v49, %v618_v48  ;;  %v746_v52 = vpop.eup %745  ;;  %v301_v49 = vsub.s32 2, %v950_v10 }
 0x12b   :  { %v748_v53 = vpop.eup %747  ;;  %v197_v56 = vmul.f32 %v746_v52, %v618_v48 }
 0x12c   :  { %207 = vadd.xlane.f32.xlu0 %v198_v51  ;;  %v201_v58 = vmul.f32 %v748_v53, %v618_v48 }
 0x12d   :  { %v750_v54 = vpop.eup %749 }
 0x12e   :  { %v200_v55 = vmul.f32 %v750_v54, %v618_v48  ;;  %v752_v57 = vpop.eup %751 }
 0x12f   :  { %v754_v59 = vpop.eup %753  ;;  %v199_v60 = vmul.f32 %v752_v57, %v618_v48 }
 0x130   :  { %211 = vadd.xlane.f32.xlu1 %v200_v55  ;;  %205 = vadd.xlane.f32.xlu0 %v197_v56  ;;  %v756_v61 = vpop.eup %755  ;;  %v203_v62 = vmul.f32 %v754_v59, %v618_v48  ;;  %v309_v55 = vsub.s32 4, %v950_v10 }
 0x131   :  { %v202_v63 = vmul.f32 %v756_v61, %v618_v48  ;;  %v758_v0 = vpop.eup %757 }
 0x132   :  { %v204_v1 = vmul.f32 %v758_v0, %v618_v48  ;;  %v297_v48 = vsub.s32 1, %v950_v10 }
 0x134   :  { %209 = vadd.xlane.f32.xlu1 %v199_v60  ;;  %213 = vadd.xlane.f32.xlu0 %v201_v58 }
 0x138   :  { %215 = vadd.xlane.f32.xlu1 %v202_v63  ;;  %217 = vadd.xlane.f32.xlu0 %v203_v62  ;;  %v313_v62 = vsub.s32 5, %v950_v10 }
 0x13c   :  { %219 = vadd.xlane.f32.xlu1 %v204_v1 }
 0x1b9   :  { %v208_v2 = vpop.xlane.xlu0 %207 }
 0x1ba   :  { %759 = vtanh.f32 %v208_v2  ;;  %v317_v2 = vsub.s32 6, %v950_v10 }
 0x1bd   :  { %v212_v3 = vpop.xlane.xlu1 %211  ;;  %v206_v4 = vpop.xlane.xlu0 %205 }
 0x1be   :  { %761 = vtanh.f32 %v206_v4 }
 0x1bf   :  { %763 = vtanh.f32 %v212_v3 }
 0x1c1   :  { %v210_v6 = vpop.xlane.xlu1 %209  ;;  %v214_v7 = vpop.xlane.xlu0 %213 }
 0x1c2   :  { %765 = vtanh.f32 %v210_v6  ;;  %v321_v6 = vsub.s32 7, %v950_v10 }
 0x1c3   :  { %767 = vtanh.f32 %v214_v7 }
 0x1c4   :  { %v760_v14 = vpop.eup %759 }
 0x1c5   :  { %v216_v11 = vpop.xlane.xlu1 %215  ;;  %v218_v13 = vpop.xlane.xlu0 %217  ;;  %v246_v21 = vrot.slane %v760_v14, %v953_v15 }
 0x1c6   :  { %769 = vtanh.f32 %v216_v11 }
 0x1c7   :  { %771 = vtanh.f32 %v218_v13 }
 0x1c8   :  { %v762_v16 = vpop.eup %761 }
 0x1c9   :  { %v220_v17 = vpop.xlane.xlu1 %219  ;;  %v242_v18 = vrot.slane %v762_v16, %v953_v15  ;;  %v764_v19 = vpop.eup %763 }
 0x1ca   :  { %773 = vtanh.f32 %v220_v17  ;;  %v254_v24 = vrot.slane %v764_v19, %v953_v15 }
 0x1cb   :  { %v272_v32 = vsel %vm271_vm0, %v246_v21, %v242_v18 }
 0x1cc   :  { %v766_v20 = vpop.eup %765 }
 0x1cd   :  { %v768_v22 = vpop.eup %767  ;;  %v250_v23 = vrot.slane %v766_v20, %v953_v15 }
 0x1ce   :  { %v258_v25 = vrot.slane %v768_v22, %v953_v15 }
 0x1cf   :  { %v274_v33 = vsel %vm273_vm1, %v250_v23, %v272_v32 }
 0x1d0   :  { %v770_v34 = vpop.eup %769  ;;  %v276_v35 = vsel %vm275_vm2, %v254_v24, %v274_v33 }
 0x1d1   :  { %v772_v36 = vpop.eup %771  ;;  %v262_v37 = vrot.slane %v770_v34, %v953_v15  ;;  %v278_v38 = vsel %vm277_vm3, %v258_v25, %v276_v35 }
 0x1d2   :  { %v266_v39 = vrot.slane %v772_v36, %v953_v15 }
 0x1d3   :  { %v280_v40 = vsel %vm279_vm4, %v262_v37, %v278_v38 }
 0x1d4   :  { %v774_v41 = vpop.eup %773  ;;  %v282_v43 = vsel %vm281_vm5, %v266_v39, %v280_v40 }
 0x1d5   :  { %v270_v42 = vrot.slane %v774_v41, %v953_v15 }
 0x1d7   :  { %v284_v44 = vsel %vm283_vm6, %v270_v42, %v282_v43 }
 0x1d8   :  { %v287_v45 = vsel %vm286_vm7, %v284_v44, -inf }
 0x1d9   :  { %288 = vmax.xlane.f32.xlu0 %v287_v45 }
 0x266   :  { %v289_v51 = vpop.xlane.xlu0 %288 }
 0x267   :  { %v294_v52 = vrot.slane %v289_v51, %v293_v47  ;;  %v298_v53 = vrot.slane %v289_v51, %v297_v48  ;;  %v302_v54 = vrot.slane %v289_v51, %v301_v49  ;;  %v306_v56 = vrot.slane %v289_v51, %v305_v50 }
 0x268   :  { %v310_v63 = vrot.slane %v289_v51, %v309_v55  ;;  %v314_v3 = vrot.slane %v289_v51, %v313_v62  ;;  %v318_v7 = vrot.slane %v289_v51, %v317_v2 }
 0x269   :  { %v331_v57 = vsub.f32 %v762_v16, %v294_v52  ;;  %v332_v58 = vsub.f32 %v760_v14, %v298_v53  ;;  %v333_v59 = vsub.f32 %v766_v20, %v302_v54  ;;  %v334_v0 = vsub.f32 %v764_v19, %v306_v56 }
 0x26a   :  { %v335_v4 = vsub.f32 %v768_v22, %v310_v63  ;;  %v336_v8 = vsub.f32 %v770_v34, %v314_v3  ;;  %v322_v16 = vrot.slane %v289_v51, %v321_v6  ;;  %v337_v17 = vsub.f32 %v772_v36, %v318_v7 }
 0x26b   :  { %v339_v60 = vmul.f32 1.442695, %v331_v57  ;;  %v341_v61 = vmul.f32 1.442695, %v332_v58  ;;  %v343_v1 = vmul.f32 1.442695, %v333_v59 }
 0x26c   :  { %v345_v5 = vmul.f32 1.442695, %v334_v0  ;;  %v347_v11 = vmul.f32 1.442695, %v335_v4  ;;  %v349_v18 = vmul.f32 1.442695, %v336_v8  ;;  %v338_v20 = vsub.f32 %v774_v41, %v322_v16 }
 0x26d   :  { %775 = vpow2.f32 %v339_v60  ;;  %v351_v21 = vmul.f32 1.442695, %v337_v17 }
 0x26e   :  { %777 = vpow2.f32 %v341_v61  ;;  %v353_v23 = vmul.f32 1.442695, %v338_v20 }
 0x26f   :  { %779 = vpow2.f32 %v343_v1 }
 0x270   :  { %781 = vpow2.f32 %v345_v5 }
 0x271   :  { %783 = vpow2.f32 %v347_v11 }
 0x272   :  { %785 = vpow2.f32 %v349_v18 }
 0x273   :  { %787 = vpow2.f32 %v351_v21 }
 0x274   :  { %789 = vpow2.f32 %v353_v23 }
 0x277   :  { %v776_v13 = vpop.eup %775 }
 0x278   :  { %v778_v14 = vpop.eup %777  ;;  %364 = vperm.xlu1 %741, %v776_v13  }
 0x279   :  { %367 = vperm.xlu0 %742, %v778_v14   ;;  %v780_v19 = vpop.eup %779 }
 0x27a   :  { %v782_v22 = vpop.eup %781 }
 0x27b   :  { %v784_v24 = vpop.eup %783 }
 0x27c   :  { %370 = vperm.xlu1 %741, %v780_v19   ;;  %v786_v25 = vpop.eup %785 }
 0x27d   :  { %v788_v32 = vpop.eup %787 }
 0x27e   :  { %v790_v33 = vpop.eup %789 }
 0x280   :  { %373 = vperm.xlu1 %741, %v782_v22  }
 0x284   :  { %376 = vperm.xlu1 %741, %v784_v24  }
 0x288   :  { %379 = vperm.xlu1 %741, %v786_v25  }
 0x28c   :  { %382 = vperm.xlu1 %741, %v788_v32  }
 0x290   :  { %385 = vperm.xlu1 %741, %v790_v33  }
 0x2f7   :  { %v365_v34 = vpop.permute.xlu1 %364 }
 0x2f8   :  { %v368_v38 = vpop.permute.xlu0 %367  ;;  %v390_v41 = vrot.slane %v365_v34, %v953_v15 }
 0x2f9   :  { %v394_v40 = vrot.slane %v368_v38, %v953_v15 }
 0x2fb   :  { %v371_v35 = vpop.permute.xlu1 %370  ;;  %v419_v46 = vsel %vm271_vm0, %v394_v40, %v390_v41 }
 0x2fc   :  { %v398_v42 = vrot.slane %v371_v35, %v953_v15 }
 0x2fe   :  { %v420_v52 = vsel %vm273_vm1, %v398_v42, %v419_v46 }
 0x2ff   :  { %v374_v36 = vpop.permute.xlu1 %373 }
 0x300   :  { %v402_v43 = vrot.slane %v374_v36, %v953_v15 }
 0x302   :  { %v421_v54 = vsel %vm275_vm2, %v402_v43, %v420_v52 }
 0x303   :  { %v377_v37 = vpop.permute.xlu1 %376 }
 0x304   :  { %v406_v44 = vrot.slane %v377_v37, %v953_v15 }
 0x306   :  { %v422_v56 = vsel %vm277_vm3, %v406_v44, %v421_v54 }
 0x307   :  { %v380_v39 = vpop.permute.xlu1 %379 }
 0x308   :  { %v410_v51 = vrot.slane %v380_v39, %v953_v15 }
 0x30a   :  { %v423_v58 = vsel %vm279_vm4, %v410_v51, %v422_v56 }
 0x30b   :  { %v383_v45 = vpop.permute.xlu1 %382 }
 0x30c   :  { %v414_v53 = vrot.slane %v383_v45, %v953_v15 }
 0x30e   :  { %v424_v60 = vsel %vm281_vm5, %v414_v53, %v423_v58 }
 0x30f   :  { %v386_v57 = vpop.permute.xlu1 %385 }
 0x310   :  { %v418_v59 = vrot.slane %v386_v57, %v953_v15 }
 0x312   :  { %v425_v61 = vsel %vm283_vm6, %v418_v59, %v424_v60 }
 0x313   :  { %v427_v63 = vsel %vm286_vm7, %v425_v61, 0.0 }
 0x314   :  { %428 = vadd.xlane.f32.xlu1 %v427_v63 }
 0x3a1   :  { %v429_v0 = vpop.xlane.xlu1 %428 }
 0x3a2   :  { %791 = vrcp.f32 %v429_v0 }
 0x3ac   :  { %v792_v1 = vpop.eup %791 }
 0x3ad   :  { %v435_v3 = vrot.slane %v792_v1, %v293_v47  ;;  %v439_v5 = vrot.slane %v792_v1, %v297_v48  ;;  %v443_v15 = vrot.slane %v792_v1, %v301_v49  ;;  %v447_v11 = vrot.slane %v792_v1, %v305_v50 }
 0x3ae   :  { %v451_v17 = vrot.slane %v792_v1, %v309_v55  ;;  %v455_v48 = vrot.slane %v792_v1, %v313_v62  ;;  %v459_v49 = vrot.slane %v792_v1, %v317_v2  ;;  %v463_v50 = vrot.slane %v792_v1, %v321_v6 }
 0x3af   :  { %v472_v4 = vmul.f32 %v776_v13, %v435_v3  ;;  %v473_v7 = vmul.f32 %v778_v14, %v439_v5  ;;  %v474_v8 = vmul.f32 %v780_v19, %v443_v15  ;;  %v475_v16 = vmul.f32 %v782_v22, %v447_v11 }
 0x3b0   :  { %v476_v47 = vmul.f32 %v784_v24, %v451_v17  ;;  %v477_v13 = vmul.f32 %v786_v25, %v455_v48  ;;  %v478_v14 = vmul.f32 %v788_v32, %v459_v49  ;;  %v479_v18 = vmul.f32 %v790_v33, %v463_v50 }
 0x3b1   :  { %482 = vperm.xlu0 %742, %v472_v4  }
 0x3b5   :  { %487 = vperm.xlu0 %742, %v473_v7  }
 0x3b9   :  { %492 = vperm.xlu0 %742, %v474_v8  }
 0x3bd   :  { %497 = vperm.xlu0 %742, %v475_v16  }
 0x3c1   :  { %502 = vperm.xlu0 %742, %v476_v47  }
 0x3c5   :  { %507 = vperm.xlu0 %742, %v477_v13  }
 0x3c9   :  { %512 = vperm.xlu0 %742, %v478_v14  }
 0x3cd   :  { %517 = vperm.xlu0 %742, %v479_v18  }
 0x430   :  { %v483_v19 = vpop.permute.xlu0 %482 }
 0x431   :  { %v520_v22 = vmul.f32 %v483_v19, %v920_v9 }
 0x433   :  { %v528_v32 = vrot.slane %v520_v22, 4 }
 0x434   :  { %v488_v55 = vpop.permute.xlu0 %487 }
 0x435   :  { %v521_v21 = vmul.f32 %v488_v55, %v926_v26  ;;  %v529_v36 = vadd.f32 %v528_v32, %v520_v22 }
 0x437   :  { %v534_v24 = vrot.slane %v521_v21, 4  ;;  %v530_v41 = vrot.slane %v529_v36, 2 }
 0x438   :  { %v493_v20 = vpop.permute.xlu0 %492 }
 0x439   :  { %v522_v62 = vmul.f32 %v493_v20, %v930_v28  ;;  %v535_v34 = vadd.f32 %v534_v24, %v521_v21  ;;  %v531_v52 = vadd.f32 %v530_v41, %v529_v36 }
 0x43b   :  { %v540_v25 = vrot.slane %v522_v62, 4  ;;  %v536_v39 = vrot.slane %v535_v34, 2  ;;  %v532_v0 = vrot.slane %v531_v52, 1 }
 0x43c   :  { %v498_v23 = vpop.permute.xlu0 %497 }
 0x43d   :  { %v523_v2 = vmul.f32 %v498_v23, %v937_v30  ;;  %v541_v35 = vadd.f32 %v540_v25, %v522_v62  ;;  %v537_v45 = vadd.f32 %v536_v39, %v535_v34  ;;  %v533_v16 = vadd.f32 %v532_v0, %v531_v52 }
 0x43f   :  { %v546_v10 = vrot.slane %v523_v2, 4  ;;  %v542_v40 = vrot.slane %v541_v35, 2  ;;  %v538_v59 = vrot.slane %v537_v45, 1 }
 0x440   :  { %v503_v6 = vpop.permute.xlu0 %502 }
 0x441   :  { %v524_v33 = vmul.f32 %v503_v6, %v923_v12  ;;  %v547_v37 = vadd.f32 %v546_v10, %v523_v2  ;;  %v543_v12 = vadd.f32 %v542_v40, %v541_v35  ;;  %v539_v7 = vadd.f32 %v538_v59, %v537_v45 }
 0x443   :  { %v552_v38 = vrot.slane %v524_v33, 4  ;;  %v548_v42 = vrot.slane %v547_v37, 2  ;;  %v544_v63 = vrot.slane %v543_v12, 1  ;;  %v592_v49 = vsel %vm271_vm0, %v539_v7, %v533_v16 }
 0x444   :  { %v508_v26 = vpop.permute.xlu0 %507 }
 0x445   :  { %v553_v28 = vadd.f32 %v552_v38, %v524_v33  ;;  %v525_v9 = vmul.f32 %v508_v26, %v928_v27  ;;  %v549_v53 = vadd.f32 %v548_v42, %v547_v37  ;;  %v545_v11 = vadd.f32 %v544_v63, %v543_v12 }
 0x447   :  { %v558_v30 = vrot.slane %v525_v9, 4  ;;  %v554_v43 = vrot.slane %v553_v28, 2  ;;  %v550_v1 = vrot.slane %v549_v53, 1  ;;  %v593_v50 = vsel %vm273_vm1, %v545_v11, %v592_v49 }
 0x448   :  { %v513_v44 = vpop.permute.xlu0 %512 }
 0x449   :  { %v559_v46 = vadd.f32 %v558_v30, %v525_v9  ;;  %v526_v51 = vmul.f32 %v513_v44, %v932_v29  ;;  %v555_v57 = vadd.f32 %v554_v43, %v553_v28  ;;  %v551_v17 = vadd.f32 %v550_v1, %v549_v53 }
 0x44b   :  { %v560_v54 = vrot.slane %v559_v46, 2  ;;  %v564_v56 = vrot.slane %v526_v51, 4  ;;  %v556_v5 = vrot.slane %v555_v57, 1  ;;  %v594_v19 = vsel %vm275_vm2, %v551_v17, %v593_v50 }
 0x44c   :  { %v518_v58 = vpop.permute.xlu0 %517 }
 0x44d   :  { %v561_v60 = vadd.f32 %v560_v54, %v559_v46  ;;  %v565_v27 = vadd.f32 %v564_v56, %v526_v51  ;;  %v527_v61 = vmul.f32 %v518_v58, %v940_v31  ;;  %v557_v13 = vadd.f32 %v556_v5, %v555_v57 }
 0x44f   :  { %v566_v3 = vrot.slane %v565_v27, 2  ;;  %v570_v4 = vrot.slane %v527_v61, 4  ;;  %v562_v29 = vrot.slane %v561_v60, 1  ;;  %v595_v20 = vsel %vm277_vm3, %v557_v13, %v594_v19 }
 0x451   :  { %v567_v15 = vadd.f32 %v566_v3, %v565_v27  ;;  %v571_v8 = vadd.f32 %v570_v4, %v527_v61  ;;  %v563_v14 = vadd.f32 %v562_v29, %v561_v60 }
 0x453   :  { %v568_v47 = vrot.slane %v567_v15, 1  ;;  %v572_v48 = vrot.slane %v571_v8, 2  ;;  %v596_v62 = vsel %vm279_vm4, %v563_v14, %v595_v20 }
 0x455   :  { %v573_v31 = vadd.f32 %v572_v48, %v571_v8  ;;  %v569_v18 = vadd.f32 %v568_v47, %v567_v15 }
 0x457   :  { %v574_v55 = vrot.slane %v573_v31, 1  ;;  %v597_v22 = vsel %vm281_vm5, %v569_v18, %v596_v62 }
 0x459   :  { %v575_v21 = vadd.f32 %v574_v55, %v573_v31 }
 0x45b   :  { %v598_v23 = vsel %vm283_vm6, %v575_v21, %v597_v22 }
 0x45c   :  { %600 = vst [vmem:[#allocation7] sm:$0xff] %v598_v23 }
 0x45d   :  { %848 = shalt.err (!%p845_p6)
}
 0x45e   :  { %s849_s20 = scalar_lea.hbm %s1058_s4, 128 }
 0x45f   :  { %p850_p7 = scmp.ne.s32.totalorder %s1058_s4, %s849_s20  ;;  %p853_p8 = scmp.lt.u32.totalorder %s849_s20, %s1058_s4 }
 0x461   :  { %p855_p9 = pnand %p853_p8, %p850_p7 }
 0x463   :  { %858 = shalt.err (!%p855_p9)
}
 0x464   :  { %610 = dma.vmem_to_hbm [thread:$0]  %s608_s16, 128, %s1058_s4, [#allocation4]  }
 0x465   :  { %863 = dma.done.wait [#allocation4], 128  }
 0x466   :  { %864 = vsyncadd [#allocation4], 4294967168 }
 0x467   :  { %614 = vsyncpa [#allocation3], 1 }
 0x468   :  { %615 = vsyncpa [#allocation6], 1 }
 0x469   :  { %616 = vsyncpa [#allocation4], 1 }

</bundles_post_ra>
